<compile_context>
chip_gen: v7x
topology: tpu7x:2x2x1
jax: 0.10.0
libtpu: 0.0.40
codegen_flags: <defaults>
</compile_context>

<pallas_src>
import jax
import jax.numpy as jnp
from jax.experimental import pallas as pl
from jax.experimental.pallas import tpu as pltpu


def _round_up(x, m):
    return (x + m - 1) // m * m


def _vmem_limit_bytes():
    """~3/4 of physical VMEM: 96 MiB on v5e/v6e (128 MiB), 48 MiB on v7x (64 MiB)."""
    cap = 64 * 1024 * 1024  # conservative fallback (v7x physical VMEM)
    try:
        info = pltpu.get_tpu_info()
        cap = int(getattr(info, "vmem_capacity_bytes", cap) or cap)
    except Exception:
        pass
    return (cap * 3) // 4


def _choose_tiles(n_rows, Mp, Np, stream_bytes, n_streams, e_vmem_bytes, vmem_limit):
    """Pick (TM, TN): multiples of 128 dividing the padded dims, VMEM-aware."""

    def pick(dim, cap):
        for c in (1024, 512, 256, 128):
            if c <= cap and dim % c == 0:
                return c
        return 128  # dims are multiples of 128 by construction

    def est(tm, tn):
        v = n_streams * 2 * tm * tn * stream_bytes   # Z / Beta, double-buffered
        v += e_vmem_bytes(tm)                        # E (resident or 2 tiles)
        v += 2 * n_rows * tn * 4                     # BF (f32, 2 bufs)
        v += 2 * n_rows * tn * 4                     # output tile
        v += n_rows * tn * 4                         # f32 accumulator
        return v

    # v7x has 2 TensorCores and N is the only "parallel" grid axis: keep at
    # least 2 N-tiles whenever possible so neither core sits idle.
    tn_cap = Np // 2 if Np >= 256 else Np
    tm_cap = 1024
    budget = int(vmem_limit * 0.8)
    while True:
        tm, tn = pick(Mp, tm_cap), pick(Np, tn_cap)
        if est(tm, tn) <= budget or (tm == 128 and tn == 128):
            return tm, tn
        if tm >= tn and tm > 128:
            tm_cap = tm // 2
        elif tn > 128:
            tn_cap = tn // 2
        else:
            tm_cap = tm // 2


def _make_recon_kernel(has_beta, resident_e, mxu_dtype):
    def kernel(*refs):
        if has_beta:
            e_ref, z_ref, beta_ref, bf_ref, q_ref, acc_ref = refs
        else:
            e_ref, r_ref, bf_ref, q_ref, acc_ref = refs

        l = pl.program_id(1)   # layer   (reduction axis)
        m = pl.program_id(2)   # M tile  (reduction axis)

        @pl.when((l == 0) & (m == 0))
        def _():
            acc_ref[...] = jnp.zeros_like(acc_ref)

        if has_beta:
            # Subtract in f32: exact for nearby bf16-stored Z/Beta (no extra
            # cancellation); the VPU cost is hidden under the per-step DMA.
            diff = z_ref[...].astype(jnp.float32) - beta_ref[...].astype(jnp.float32)
        else:
            diff = r_ref[...].astype(jnp.float32)

        if resident_e:
            # Whole E lives in VMEM, pre-tiled to (L*MT, n, TM): one dynamic
            # leading-axis index, no lane-axis dynamic slicing.
            e_blk = e_ref[l * pl.num_programs(2) + m]
        else:
            e_blk = e_ref[...]

        acc_ref[...] += jnp.dot(
            e_blk, diff.astype(mxu_dtype), preferred_element_type=jnp.float32
        )

        @pl.when((l == pl.num_programs(1) - 1) & (m == pl.num_programs(2) - 1))
        def _():
            q_ref[...] = (bf_ref[...] + acc_ref[...]).astype(q_ref.dtype)

    return kernel


def precompute_recon_params(D, B, rho):
    """Init-time precompute: E_l = rho * B @ D_l.T  ->  (L, n, M)."""
    return rho * jnp.einsum("ij,lmj->lim", B, D)


def reconstruction_block(E, Z, Beta, F, B, *, stream_dtype=jnp.bfloat16):
    """Q_hat = B @ F + sum_l E_l @ (Z_l - Beta_l).

    E: (L, n, M)   Z, Beta: (L, M, N)   F: (n, N)   B: (n, n)  ->  (n, N).
    If Beta is None, Z is interpreted as the precomputed residual R = Z - Beta
    (single HBM stream; ~1.8x less traffic on this bandwidth-bound kernel).
    """
    L, n, M = E.shape
    N = F.shape[1]
    out_dtype = F.dtype
    has_beta = Beta is not None
    n_streams = 2 if has_beta else 1

    # Tiny per-forward matmul done by XLA outside the kernel; kept f32
    # end-to-end (read once per output tile -> negligible HBM traffic).
    BF = jnp.dot(B.astype(jnp.float32), F.astype(jnp.float32),
                 preferred_element_type=jnp.float32)

    # Zero-pad M and N to multiples of 128 (exact: padded rows/cols contribute
    # nothing; padded output columns are sliced off).
    Mp, Np = _round_up(M, 128), _round_up(N, 128)
    if Mp != M:
        E = jnp.pad(E, ((0, 0), (0, 0), (0, Mp - M)))
        Z = jnp.pad(Z, ((0, 0), (0, Mp - M), (0, 0)))
        if has_beta:
            Beta = jnp.pad(Beta, ((0, 0), (0, Mp - M), (0, 0)))
    if Np != N:
        Z = jnp.pad(Z, ((0, 0), (0, 0), (0, Np - N)))
        if has_beta:
            Beta = jnp.pad(Beta, ((0, 0), (0, 0), (0, Np - N)))
        BF = jnp.pad(BF, ((0, 0), (0, Np - N)))

    # bf16 streaming by default: halves the dominant HBM traffic on a
    # bandwidth-bound kernel.  Accumulation stays f32.
    E = E.astype(stream_dtype)
    Z = Z.astype(stream_dtype)
    if has_beta:
        Beta = Beta.astype(stream_dtype)

    stream_bytes = jnp.dtype(stream_dtype).itemsize
    vmem_limit = _vmem_limit_bytes()

    e_total_bytes = L * n * Mp * stream_bytes
    resident_e = e_total_bytes <= 8 * 1024 * 1024
    e_vmem = (lambda tm: 2 * e_total_bytes) if resident_e else (
        lambda tm: 2 * n * tm * stream_bytes)

    TM, TN = _choose_tiles(n, Mp, Np, stream_bytes, n_streams, e_vmem, vmem_limit)
    MT = Mp // TM
    grid = (Np // TN, L, MT)

    in_specs, args = [], []
    if resident_e:
        # Resident E: constant index_map -> fetched from HBM exactly once
        # (no N/TN re-reads).  Pre-tile to (L*MT, n, TM) in the wrapper.
        E_tiled = E.reshape(L, n, MT, TM).transpose(0, 2, 1, 3).reshape(L * MT, n, TM)
        in_specs.append(pl.BlockSpec((L * MT, n, TM), lambda j, l, m: (0, 0, 0)))
        args.append(E_tiled)
    else:
        in_specs.append(pl.BlockSpec((pl.Squeezed(), n, TM), lambda j, l, m: (l, 0, m)))
        args.append(E)

    zb_spec = pl.BlockSpec((pl.Squeezed(), TM, TN), lambda j, l, m: (l, m, j))
    in_specs.append(zb_spec)
    args.append(Z)
    if has_beta:
        in_specs.append(zb_spec)
        args.append(Beta)

    in_specs.append(pl.BlockSpec((n, TN), lambda j, l, m: (0, j)))   # BF (f32)
    args.append(BF)

    kernel = _make_recon_kernel(has_beta, resident_e, stream_dtype)

    q = pl.pallas_call(
        kernel,
        out_shape=jax.ShapeDtypeStruct((n, Np), out_dtype),
        grid_spec=pltpu.PrefetchScalarGridSpec(
            num_scalar_prefetch=0,
            grid=grid,
            in_specs=in_specs,
            out_specs=pl.BlockSpec((n, TN), lambda j, l, m: (0, j)),
            scratch_shapes=[pltpu.VMEM((n, TN), jnp.float32)],   # S accumulator
        ),
        compiler_params=pltpu.CompilerParams(
            dimension_semantics=("parallel", "arbitrary", "arbitrary"),
            vmem_limit_bytes=int(vmem_limit),
        ),
    )(*args)

    return q[:, :N] if Np != N else q


def reference(D, Z, Beta, F, B, rho):
    S = jnp.zeros((D.shape[2], F.shape[1]), jnp.float32)
    for l in range(D.shape[0]):
        S = S + D[l].T @ (Z[l] - Beta[l])
    return B @ (F + rho * S)


if __name__ == "__main__":
    rho = 0.5
    key = jax.random.PRNGKey(0)
    kD, kZ, kB, kF, kD2, kZ2, kB2, kF2 = jax.random.split(key, 8)

    # --- main shapes (M, N multiples of 128; N tiles into >= 2 blocks) ---
    L, M, n, N = 3, 256, 64, 384
    D = jax.random.normal(kD, (L, M, n), jnp.float32) * 0.1
    Z = jax.random.normal(kZ, (L, M, N), jnp.float32)
    Beta = jax.random.normal(kB, (L, M, N), jnp.float32)
    F = jax.random.normal(kF, (n, N), jnp.float32)

    # Parameter setup (mirrors the PyTorch __init__): plain JAX glue.
    # TODO(synk): torch.inverse has no Pallas equivalent; B is built with
    # jnp.linalg.inv at init time, outside the kernel.
    DtD = jnp.einsum("lmn,lmk->nk", D, D)
    B = jnp.linalg.inv(jnp.eye(n, dtype=jnp.float32) + rho * DtD)
    E = precompute_recon_params(D, B, rho)          # rho folded into E_l

    q_ref = reference(D, Z, Beta, F, B, rho)

    # f32 streams: tight check against the reference.
    q32 = jax.block_until_ready(
        reconstruction_block(E, Z, Beta, F, B, stream_dtype=jnp.float32))
    assert jnp.allclose(q32, q_ref, atol=1e-3, rtol=1e-3), "f32 mismatch"

    # Default bf16 streams (production path): only storage rounding differs.
    qbf = jax.block_until_ready(reconstruction_block(E, Z, Beta, F, B))
    assert jnp.allclose(qbf, q_ref, atol=3e-2, rtol=3e-2), "bf16 mismatch"

    # Single-residual-stream path (upstream ADMM update emits R = Z - Beta).
    R = Z - Beta
    qres = jax.block_until_ready(
        reconstruction_block(E, R, None, F, B, stream_dtype=jnp.float32))
    assert jnp.allclose(qres, q_ref, atol=1e-3, rtol=1e-3), "residual mismatch"

    # Non-128-multiple shapes exercise the zero-padding path.
    L2, M2, n2, N2 = 2, 200, 32, 200
    D2 = jax.random.normal(kD2, (L2, M2, n2), jnp.float32) * 0.1
    Z2 = jax.random.normal(kZ2, (L2, M2, N2), jnp.float32)
    Beta2 = jax.random.normal(kB2, (L2, M2, N2), jnp.float32)
    F2 = jax.random.normal(kF2, (n2, N2), jnp.float32)
    DtD2 = jnp.einsum("lmn,lmk->nk", D2, D2)
    B2 = jnp.linalg.inv(jnp.eye(n2, dtype=jnp.float32) + rho * DtD2)
    E2 = precompute_recon_params(D2, B2, rho)
    q2 = jax.block_until_ready(
        reconstruction_block(E2, Z2, Beta2, F2, B2, stream_dtype=jnp.float32))
    q2_ref = reference(D2, Z2, Beta2, F2, B2, rho)
    assert jnp.allclose(q2, q2_ref, atol=1e-3, rtol=1e-3), "padded-shape mismatch"

    print("KERNEL_OK")
</pallas_src>

<mosaic_0001>
module attributes {stable_mosaic.version = 11 : i64} {
  func.func @kernel(%arg0: i32, %arg1: i32, %arg2: i32, %arg3: memref<3x64x256xf32, #tpu.memory_space<vmem>>, %arg4: memref<1x256x128xf32, #tpu.memory_space<vmem>>, %arg5: memref<1x256x128xf32, #tpu.memory_space<vmem>>, %arg6: memref<64x128xf32, #tpu.memory_space<vmem>>, %arg7: memref<64x128xf32, #tpu.memory_space<vmem>>, %arg8: memref<64x128xf32, #tpu.memory_space<vmem>>) attributes {dimension_semantics = [#tpu.dimension_semantics<parallel>, #tpu.dimension_semantics<arbitrary>, #tpu.dimension_semantics<arbitrary>], iteration_bounds = array<i64: 3, 3, 1>, scalar_prefetch = 0 : i64, scratch_operands = 1 : i64, tpu.core_type = #tpu.core_type<tc>, window_params = [{pipeline_mode = #tpu.pipeline_mode<synchronous>, transform_indices = @transform_0, window_bounds = array<i64: 3, 64, 256>}, {transform_indices = @transform_1, window_bounds = array<i64: 1, 256, 128>}, {transform_indices = @transform_2, window_bounds = array<i64: 1, 256, 128>}, {transform_indices = @transform_3, window_bounds = array<i64: 64, 128>}, {transform_indices = @transform_4, window_bounds = array<i64: 64, 128>}]} {
    %c0_i32 = arith.constant 0 : i32
    %0 = arith.cmpi eq, %arg1, %c0_i32 : i32
    %c0_i32_0 = arith.constant 0 : i32
    %1 = arith.cmpi eq, %arg2, %c0_i32_0 : i32
    %2 = arith.andi %0, %1 : i1
    %3 = arith.extui %2 : i1 to i32
    %c0_i32_1 = arith.constant 0 : i32
    %4 = arith.cmpi ne, %3, %c0_i32_1 : i32
    scf.if %4 {
      %cst_15 = arith.constant 0.000000e+00 : f32
      %24 = vector.broadcast %cst_15 : f32 to vector<64x128xf32>
      %c0_16 = arith.constant 0 : index
      %c0_17 = arith.constant 0 : index
      %25 = vector.load %arg8[%c0_16, %c0_17] : memref<64x128xf32, #tpu.memory_space<vmem>>, vector<64x128xf32>
      tpu.vector_store %arg8[%c0_16, %c0_17], %24 {strides = array<i32>} : memref<64x128xf32, #tpu.memory_space<vmem>>, vector<64x128xf32>,
    } else {
    }
    %c0 = arith.constant 0 : index
    %c0_2 = arith.constant 0 : index
    %c0_3 = arith.constant 0 : index
    %5 = vector.load %arg4[%c0, %c0_2, %c0_3] : memref<1x256x128xf32, #tpu.memory_space<vmem>>, vector<1x256x128xf32>
    %6 = vector.shape_cast %5 : vector<1x256x128xf32> to vector<256x128xf32>
    %c0_4 = arith.constant 0 : index
    %c0_5 = arith.constant 0 : index
    %c0_6 = arith.constant 0 : index
    %7 = vector.load %arg5[%c0_4, %c0_5, %c0_6] : memref<1x256x128xf32, #tpu.memory_space<vmem>>, vector<1x256x128xf32>
    %8 = vector.shape_cast %7 : vector<1x256x128xf32> to vector<256x128xf32>
    %9 = arith.subf %6, %8 : vector<256x128xf32>
    %c1_i32 = arith.constant 1 : i32
    %10 = arith.muli %arg1, %c1_i32 : i32
    %11 = arith.addi %10, %arg2 : i32
    %12 = arith.index_cast %11 : i32 to index
    %c0_7 = arith.constant 0 : index
    %c0_8 = arith.constant 0 : index
    %13 = vector.load %arg3[%12, %c0_7, %c0_8] : memref<3x64x256xf32, #tpu.memory_space<vmem>>, vector<1x64x256xf32>
    %14 = vector.shape_cast %13 : vector<1x64x256xf32> to vector<64x256xf32>
    %c0_9 = arith.constant 0 : index
    %c0_10 = arith.constant 0 : index
    %15 = vector.load %arg8[%c0_9, %c0_10] : memref<64x128xf32, #tpu.memory_space<vmem>>, vector<64x128xf32>
    %cst = arith.constant dense<0.000000e+00> : vector<64x128xf32>
    %16 = tpu.matmul %14, %9, %cst {dimension_numbers = #tpu.dot_dimension_numbers<[1], [0], [0], [1], [0, 0, 1, 1], [], []>} : vector<64x256xf32>, vector<256x128xf32>, vector<64x128xf32> -> vector<64x128xf32>
    %17 = arith.addf %15, %16 : vector<64x128xf32>
    %c0_11 = arith.constant 0 : index
    %c0_12 = arith.constant 0 : index
    %18 = vector.load %arg8[%c0_11, %c0_12] : memref<64x128xf32, #tpu.memory_space<vmem>>, vector<64x128xf32>
    tpu.vector_store %arg8[%c0_11, %c0_12], %17 {strides = array<i32>} : memref<64x128xf32, #tpu.memory_space<vmem>>, vector<64x128xf32>,
    %c2_i32 = arith.constant 2 : i32
    %19 = arith.cmpi eq, %arg1, %c2_i32 : i32
    %c0_i32_13 = arith.constant 0 : i32
    %20 = arith.cmpi eq, %arg2, %c0_i32_13 : i32
    %21 = arith.andi %19, %20 : i1
    %22 = arith.extui %21 : i1 to i32
    %c0_i32_14 = arith.constant 0 : i32
    %23 = arith.cmpi ne, %22, %c0_i32_14 : i32
    scf.if %23 {
      %c0_15 = arith.constant 0 : index
      %c0_16 = arith.constant 0 : index
      %24 = vector.load %arg6[%c0_15, %c0_16] : memref<64x128xf32, #tpu.memory_space<vmem>>, vector<64x128xf32>
      %c0_17 = arith.constant 0 : index
      %c0_18 = arith.constant 0 : index
      %25 = vector.load %arg8[%c0_17, %c0_18] : memref<64x128xf32, #tpu.memory_space<vmem>>, vector<64x128xf32>
      %26 = arith.addf %24, %25 : vector<64x128xf32>
      %c0_19 = arith.constant 0 : index
      %c0_20 = arith.constant 0 : index
      %27 = vector.load %arg7[%c0_19, %c0_20] : memref<64x128xf32, #tpu.memory_space<vmem>>, vector<64x128xf32>
      tpu.vector_store %arg7[%c0_19, %c0_20], %26 {strides = array<i32>} : memref<64x128xf32, #tpu.memory_space<vmem>>, vector<64x128xf32>,
    } else {
    }
    return
  }
  func.func @transform_0(%arg0: i32, %arg1: i32, %arg2: i32) -> (i32, i32, i32) {
    %c0_i32 = arith.constant 0 : i32
    %c0_i32_0 = arith.constant 0 : i32
    %c0_i32_1 = arith.constant 0 : i32
    %c0_i32_2 = arith.constant 0 : i32
    return %c0_i32, %c0_i32_0, %c0_i32_1 : i32, i32, i32
  }
  func.func @transform_1(%arg0: i32, %arg1: i32, %arg2: i32) -> (i32, i32, i32) {
    %c0_i32 = arith.constant 0 : i32
    return %arg1, %arg2, %arg0 : i32, i32, i32
  }
  func.func @transform_2(%arg0: i32, %arg1: i32, %arg2: i32) -> (i32, i32, i32) {
    %c0_i32 = arith.constant 0 : i32
    return %arg1, %arg2, %arg0 : i32, i32, i32
  }
  func.func @transform_3(%arg0: i32, %arg1: i32, %arg2: i32) -> (i32, i32) {
    %c0_i32 = arith.constant 0 : i32
    %c0_i32_0 = arith.constant 0 : i32
    return %c0_i32, %arg0 : i32, i32
  }
  func.func @transform_4(%arg0: i32, %arg1: i32, %arg2: i32) -> (i32, i32) {
    %c0_i32 = arith.constant 0 : i32
    %c0_i32_0 = arith.constant 0 : i32
    return %c0_i32, %arg0 : i32, i32
  }
}

</mosaic_0001>

<bundles_post_ra>
// kernel: tpu_custom_call.1
= control target key start
LH: loop header
LB: loop body
LE: loop exit
PB: predicated region body
PF: predicated region fallthrough
CT: control target
= control target key end

     0   :  { %s1882_s0 = inlined_call_operand.hbm [shape: f32[3,64,256], index: 0, kind: input, shape index: {}]   ;;  %s1883_s1 = inlined_call_operand.hbm [shape: f32[3,256,384], index: 1, kind: input, shape index: {}]   ;;  %s1884_s2 = inlined_call_operand.hbm [shape: f32[3,256,384], index: 2, kind: input, shape index: {}]   ;;  %s1885_s3 = inlined_call_operand.hbm [shape: f32[64,384], index: 3, kind: input, shape index: {}]   ;;  %s1886_s4 = inlined_call_operand.hbm [shape: f32[64,384], index: 4, kind: output, shape index: {}]  }
   0x1   :  { %1904 = sst [smem:[#allocation22_spill]] %s1883_s1 }
   0x2   :  { %1905 = sst [smem:[#allocation23_spill]] %s1884_s2 }
   0x3   :  { %9 = vsyncpa [#allocation4], 0 }
   0x4   :  { %10 = vsyncpa [#allocation7], 0 }
   0x5   :  { %12 = vsyncpa [#allocation7 + $0x1], 0 }
   0x6   :  { %13 = vsyncpa [#allocation10], 0 }
   0x7   :  { %15 = vsyncpa [#allocation10 + $0x1], 0 }
   0x8   :  { %16 = vsyncpa [#allocation5], 0 }
   0x9   :  { %18 = vsyncpa [#allocation5 + $0x1], 0  ;;  %s1361_s15 = smov 0   ;;  %s1363_s16 = smov 0  }
   0xa   :  { %s1365_s17 = smov 0   ;;  %s1367_s18 = smov 0  }
   0xb   :  { %s1369_s19 = smov 0   ;;  %s1371_s20 = smov 0  }
   0xc   :  { %s1373_s21 = smov 0   ;;  %s1375_s22 = smov 0  }
   0xd   :  { %s1377_s23 = smov 0   ;;  %s1379_s24 = smov 0  }
   0xe   :  { %s1381_s25 = smov 0  }
   0xf LB: > { %1906 = sst [smem:[#allocation16_spill]] %s1300_s20  ;;  %s39_s26 = sadd.s32 1, %s1312_s23  ;;  %s1320_s25 = sphi %s1381_s25, %s24_s25   ;;  %s1316_s24 = sphi %s1379_s24, %s1954_s24   ;;  %s1312_s23 = sphi %s1377_s23, %s1953_s23   ;;  %s1308_s22 = sphi %s1375_s22, %s1952_s22   ;;  %s1304_s21 = sphi %s1373_s21, %s1944_s21   ;;  %s1300_s20 = sphi %s1371_s20, %s1943_s20   ;;  %s1296_s19 = sphi %s1369_s19, %s1951_s19   ;;  %s1292_s18 = sphi %s1367_s18, %s1950_s18   ;;  %s1288_s17 = sphi %s1365_s17, %s1949_s17   ;;  %s1284_s16 = sphi %s1363_s16, %s1948_s16   ;;  %s1280_s15 = sphi %s1361_s15, %s1947_s15  }
  0x10   : > { %1907 = sst [smem:[#allocation17_spill]] %s1312_s23  ;;  %s43_s27 = sadd.s32 1, %s1316_s24 }
  0x11   : > { %p41_p0 = scmp.ge.s32.totalorder %s39_s26, 3  ;;  %s75_s28 = sadd.s32 1, %s1300_s20 }
  0x12   : > { %p82_p1 = scmp.ne.s32.totalorder %s1300_s20, %s1296_s19  ;;  %p1891_p2 = scmp.eq.s32.totalorder %s1320_s25, 0 }
  0x13   : > { %s1956_s26 = smov (%p41_p0, %s39_s26), 0  ;;  %s1958_s27 = smov (!%p41_p0, %s43_s27), %s1316_s24 }
  0x14   : > { %1908 = sst [smem:[#allocation18_spill]] %s1956_s26  ;;  %s68_s29 = ssub.s32 %s1312_s23, %s1956_s26 }
  0x15   : > { %p1429_p3 = por %p1891_p2, %p82_p1  ;;  %p45_p4 = scmp.ge.s32.totalorder %s1958_s27, 3 }
  0x16   : > { %p1890_p5 = scmp.lt.s32.totalorder %s1320_s25, 9  ;;  %s207_s5 = sand.u32 1, %s1320_s25  }
  0x17   : > { %s1960_s27 = smov (%p45_p4, %s1958_s27), 0  ;;  %s209_s6 = sand.u32 1, %s1300_s20  }
  0x18   : > { %1910 = sst [smem:[#allocation19_spill]] %s1960_s27  ;;  %s1440_s7 = ssub.s32 %s1316_s24, %s1960_s27 }
  0x19   : > { %s1442_s8 = sshll.u32 %s209_s6, 8  ;;  %s72_s9 = sor.u32 %s1440_s7, %s68_s29 }
  0x1a   : > { %p73_p7 = scmp.eq.s32.totalorder %s72_s9, 0  ;;  %s938_s10 = smul.u32 96, %s1312_s23 }
  0x1b   : > { %s211_s11 = scalar_lea.vmem [#allocation6], %s1442_s8  ;;  %p1461_p8 = pnand %p1890_p5, %p1429_p3 }
  0x1c   : > { %s222_s12 = sshll.u32 %s211_s11, 4  ;;  %s1452_s14 = sadd.s32 %s1316_s24, %s938_s10  ;;  %s1454_s12 = int_to_ptr.vmem [resolvable:$true] %s222_s12 }
  0x1d   : > { %s1449_s13 = scalar_select %p73_p7, %s1300_s20, %s75_s28  }
  0x1e   : > { %s1888_s27 = sshll.u32 %s1452_s14, 7  ;;  %s1913_s1 = sld [smem:[#allocation22_spill]] }
  0x1f   : > { %1911 = sst [smem:[#allocation20_spill]] %s1449_s13  ;;  %s1472_s10 = scalar_lea.sflag [#allocation7], %s207_s5 }
  0x20   : > { %p1074_p10 = pneg %p1461_p8 }
  0x24   : > { %s1470_s28 = scalar_lea.hbm %s1913_s1, %s1888_s27  ;;  %s1077_s9 = scalar_lea.hbm %s1913_s1, 36864 }
  0x25   : > { %s1072_s30 = scalar_lea.hbm %s1470_s28, 4096  ;;  %p1078_p13 = scmp.lt.u32.totalorder %s1470_s28, %s1913_s1 }
  0x26   : > { %p1073_p9 = scmp.ne.s32.totalorder %s1470_s28, %s1072_s30  ;;  %p1079_p0 = scmp.lt.u32.totalorder %s1077_s9, %s1072_s30 }
  0x27   : > { %p1081_p3 = scmp.lt.u32.totalorder %s1072_s30, %s1470_s28 }
  0x28   : > { %p1075_p11 = pnand %p1074_p10, %p1073_p9  ;;  %p1080_p1 = por %p1079_p0, %p1078_p13 }
  0x2a   : > { %p1076_p12 = pneg %p1075_p11  ;;  %p1082_p4 = por %p1081_p3, %p1080_p1 }
  0x2c   : > { %p1083_p7 = pnand %p1082_p4, %p1076_p12 }
  0x2e   : > { %1086 = shalt.err (!%p1083_p7)
}
  0x2f   : > { %s1087_s5 = scalar_lea.vmem %s1454_s12, 4096  ;;  %s1322_s11 = smov [#allocation6]  }
  0x30   : > { %p1088_p9 = scmp.ne.s32.totalorder %s1454_s12, %s1087_s5  ;;  %s1092_s29 = sshll.u32 %s1322_s11, 4  ;;  %s1093_s29 = int_to_ptr.vmem [resolvable:$false] %s1092_s29 }
  0x31   : > { %s1094_s26 = scalar_lea.vmem %s1093_s29, 8192  ;;  %p1095_p2 = scmp.lt.s32.totalorder %s1454_s12, %s1093_s29 }
  0x32   : > { %p1090_p11 = pnand %p1088_p9, %p1074_p10  ;;  %p1096_p13 = scmp.lt.s32.totalorder %s1094_s26, %s1087_s5 }
  0x34   : > { %p1091_p5 = pneg %p1090_p11  ;;  %p1097_p0 = por %p1096_p13, %p1095_p2 }
  0x36   : > { %p1098_p1 = pnand %p1097_p0, %p1091_p5 }
  0x38   : > { %1101 = shalt.err (!%p1098_p1)
}
  0x39   : > { %s1894_s27 = smov 384   ;;  %s1896_s30 = smov 128  }
  0x3a   : > { %s1903_s9 = smov 8   ;;  %s1914_s5 = sshll.u32 %s1452_s14, 7 }
  0x3b   : > { %959 = dma.hbm_to_vmem [thread:$0]  (!%p1461_p8), %s1470_s28, 4096, %s1454_s12, %s1472_s10, %s1894_s27, %s1896_s30, %s1903_s9  }
  0x3c   : > { %s1915_s2 = sld [smem:[#allocation23_spill]]  ;;  %s236_s1 = scalar_lea.vmem [#allocation8], %s1442_s8 }
  0x3d   : > { %s247_s23 = sshll.u32 %s236_s1, 4  ;;  %s1514_s13 = sadd.s32 4294967295, %s1320_s25   ;;  %s1511_s23 = int_to_ptr.vmem [resolvable:$true] %s247_s23 }
  0x3e   : > { %s807_s20 = sadd.s32 4294967294, %s1320_s25   ;;  %p88_p2 = scmp.ne.s32.totalorder %s1296_s19, %s1292_s18 }
  0x3f   : > { %p1898_p5 = scmp.eq.s32.totalorder %s1514_s13, 0  ;;  %p144_p12 = scmp.ne.s32.totalorder %s1284_s16, %s1280_s15 }
  0x40   : > { %p174_p4 = scmp.eq.s32.totalorder %s807_s20, 8  ;;  %p808_p13 = scmp.ge.s32.totalorder %s1320_s25, 1 }
  0x41   : > { %p1525_p7 = por %p1898_p5, %p88_p2  ;;  %p1531_p9 = por %p144_p12, %p1898_p5 }
  0x42   : > { %s1508_s26 = scalar_lea.hbm %s1915_s2, %s1914_s5  ;;  %p1535_p11 = por %p174_p4, %p144_p12 }
  0x43   : > { %s1916_s1 = scalar_select %p1525_p7, 1, 0 }
  0x44   : > { %s1917_s8 = scalar_select %p1531_p9, 1, 0 }
  0x45   : > { %s1918_s12 = scalar_select %p1535_p11, 1, 0 }
  0x46   : > { %p181_p0 = scmp.lt.s32.totalorder %s1320_s25, 10  ;;  %s1326_s20 = smov [#allocation3]  }
  0x47   : > { %1919 = sst [smem:[#allocation21_spill]] %s1918_s12  ;;  %s193_s14 = sshll.u32 %s1326_s20, 4  ;;  %s1545_s14 = int_to_ptr.vmem [resolvable:$true] %s193_s14 }
  0x48   : > { %p1541_p1 = pnand %p808_p13, %p181_p0  ;;  %s1102_s28 = scalar_lea.hbm %s1508_s26, 4096 }
  0x49   : > { %p1103_p3 = scmp.ne.s32.totalorder %s1508_s26, %s1102_s28  ;;  %s1107_s29 = scalar_lea.hbm %s1915_s2, 36864 }
  0x4a   : > { %s1920_s18 = scalar_select %p1541_p1, 1, 0 }
  0x4b   : > { %p1105_p12 = pnand %p1103_p3, %p1074_p10  ;;  %p1108_p13 = scmp.lt.u32.totalorder %s1508_s26, %s1915_s2 }
  0x4c   : > { %p1109_p0 = scmp.lt.u32.totalorder %s1107_s29, %s1102_s28  ;;  %p1111_p5 = scmp.lt.u32.totalorder %s1102_s28, %s1508_s26 }
  0x4d   : > { %p1106_p4 = pneg %p1105_p12 }
  0x4e   : > { %p1110_p6 = por %p1109_p0, %p1108_p13 }
  0x50   : > { %p1112_p11 = por %p1111_p5, %p1110_p6 }
  0x52   : > { %p1113_p9 = pnand %p1112_p11, %p1106_p4 }
  0x54   : > { %1116 = shalt.err (!%p1113_p9)
}
  0x55   : > { %s1117_s20 = scalar_lea.vmem %s1511_s23, 4096  ;;  %s1327_s5 = smov [#allocation8]  }
  0x56   : > { %p1118_p3 = scmp.ne.s32.totalorder %s1511_s23, %s1117_s20  ;;  %s1122_s11 = sshll.u32 %s1327_s5, 4  ;;  %s1123_s11 = int_to_ptr.vmem [resolvable:$false] %s1122_s11 }
  0x57   : > { %s1124_s27 = scalar_lea.vmem %s1123_s11, 8192  ;;  %p1125_p7 = scmp.lt.s32.totalorder %s1511_s23, %s1123_s11 }
  0x58   : > { %p1120_p12 = pnand %p1118_p3, %p1074_p10  ;;  %p1126_p13 = scmp.lt.s32.totalorder %s1124_s27, %s1117_s20 }
  0x5a   : > { %p1121_p2 = pneg %p1120_p12  ;;  %p1127_p0 = por %p1126_p13, %p1125_p7 }
  0x5c   : > { %p1128_p6 = pnand %p1127_p0, %p1121_p2 }
  0x5e   : > { %1131 = shalt.err (!%p1128_p6)
}
  0x5f   : > { %s1921_s30 = smov 128   ;;  %s1922_s28 = smov 384  }
  0x60   : > { %962 = dma.hbm_to_vmem [thread:$0]  (!%p1461_p8), %s1508_s26, 4096, %s1511_s23, %s1472_s10, %s1922_s28, %s1921_s30, %s1903_s9  }
  0x61   : > { %p1923_p10 = scmp.eq.s32.totalorder %s1514_s13, 0  ;;  %p1924_p5 = pneg %p1541_p1 }
  0x62   : > { %s131_s6 = sadd.s32 1, %s1288_s17  ;;  %s257_s20 = sand.u32 1, %s1288_s17  }
  0x63   : > { %p1581_p7 = pnand %p1924_p5, %p1923_p10  ;;  %s1132_s27 = scalar_lea.hbm %s1882_s0, 6144 }
  0x64   : > { %p1133_p11 = scmp.ne.s32.totalorder %s1882_s0, %s1132_s27  ;;  %p1139_p3 = scmp.lt.u32.totalorder %s1132_s27, %s1882_s0 }
  0x65   : > { %p1134_p8 = pneg %p1581_p7 }
  0x67   : > { %p1135_p2 = pnand %p1134_p8, %p1133_p11 }
  0x69   : > { %p1136_p4 = pneg %p1135_p2 }
  0x6b   : > { %p1141_p12 = pnand %p1139_p3, %p1136_p4 }
  0x6d   : > { %1144 = shalt.err (!%p1141_p12)
}
  0x6e   : > { %s1145_s26 = scalar_lea.vmem %s1545_s14, 6144  ;;  %p1153_p10 = scmp.lt.s32.totalorder %s1545_s14, %s1545_s14 }
  0x6f   : > { %p1146_p13 = scmp.ne.s32.totalorder %s1545_s14, %s1145_s26  ;;  %p1154_p5 = scmp.lt.s32.totalorder %s1145_s26, %s1145_s26 }
  0x71   : > { %p1148_p0 = pnand %p1146_p13, %p1134_p8  ;;  %p1155_p9 = por %p1154_p5, %p1153_p10 }
  0x73   : > { %p1149_p6 = pneg %p1148_p0 }
  0x75   : > { %p1156_p1 = pnand %p1155_p9, %p1149_p6 }
  0x77   : > { %1159 = shalt.err (!%p1156_p1)
}
  0x78   : > { %s1328_s2 = smov 256   ;;  %s1329_s12 = smov 16  }
  0x79   : > { %955 = dma.hbm_to_vmem [thread:$0]  (!%p1581_p7), %s1882_s0, 6144, %s1545_s14, [#allocation4], %s1328_s2, %s1328_s2, %s1329_s12  }
  0x7a   : > { %p1926_p1 = scmp.eq.s32.totalorder %s1440_s7, 0  ;;  %p1927_p9 = scmp.eq.s32.totalorder %s1320_s25, 0 }
  0x7b   : > { %p1928_p11 = scmp.ne.s32.totalorder %s1288_s17, %s1284_s16  ;;  %p1930_p4 = scmp.eq.s32.totalorder %s1514_s13, 8 }
  0x7c   : > { %s1613_s27 = scalar_select %p1926_p1, %s1288_s17, %s131_s6  }
  0x7d   : > { %p140_p8 = por %p1928_p11, %p1927_p9  ;;  %p1929_p2 = pmov %p1928_p11 }
  0x7e   : > { %s815_s10 = sshll.u32 %s257_s20, 6  ;;  %s816_s26 = sshll.u32 %s1316_s24, 7 }
  0x7f   : > { %p1625_p3 = por %p1930_p4, %p1929_p2  ;;  %s1635_s5 = scalar_lea.hbm %s1885_s3, %s816_s26 }
  0x80   : > { %s261_s7 = scalar_lea.vmem [#allocation9], %s815_s10  ;;  %p1932_p7 = scmp.lt.s32.totalorder %s1320_s25, 9 }
  0x81   : > { %s267_s14 = sshll.u32 %s261_s7, 4  ;;  %s1647_s2 = scalar_lea.sflag [#allocation10], %s257_s20  ;;  %s1637_s14 = int_to_ptr.vmem [resolvable:$true] %s267_s14 }
  0x82   : > { %p1641_p12 = pnand %p1932_p7, %p140_p8  ;;  %s1160_s9 = scalar_lea.hbm %s1635_s5, 1024 }
  0x83   : > { %p1161_p13 = scmp.ne.s32.totalorder %s1635_s5, %s1160_s9  ;;  %s1165_s10 = scalar_lea.hbm %s1885_s3, 3072 }
  0x84   : > { %p1162_p0 = pneg %p1641_p12  ;;  %p1166_p5 = scmp.lt.u32.totalorder %s1635_s5, %s1885_s3 }
  0x85   : > { %p1167_p1 = scmp.lt.u32.totalorder %s1165_s10, %s1160_s9  ;;  %p1169_p11 = scmp.lt.u32.totalorder %s1160_s9, %s1635_s5 }
  0x86   : > { %p1163_p6 = pnand %p1162_p0, %p1161_p13 }
  0x87   : > { %p1168_p9 = por %p1167_p1, %p1166_p5 }
  0x88   : > { %p1164_p10 = pneg %p1163_p6 }
  0x89   : > { %p1170_p8 = por %p1169_p11, %p1168_p9 }
  0x8b   : > { %p1171_p2 = pnand %p1170_p8, %p1164_p10 }
  0x8d   : > { %1174 = shalt.err (!%p1171_p2)
}
  0x8e   : > { %s1175_s20 = scalar_lea.vmem %s1637_s14, 1024  ;;  %s1330_s7 = smov [#allocation9]  }
  0x8f   : > { %p1176_p4 = scmp.ne.s32.totalorder %s1637_s14, %s1175_s20  ;;  %s1180_s12 = sshll.u32 %s1330_s7, 4  ;;  %s1181_s12 = int_to_ptr.vmem [resolvable:$false] %s1180_s12 }
  0x90   : > { %s1182_s11 = scalar_lea.vmem %s1181_s12, 2048  ;;  %p1183_p6 = scmp.lt.s32.totalorder %s1637_s14, %s1181_s12 }
  0x91   : > { %p1178_p7 = pnand %p1176_p4, %p1162_p0  ;;  %p1184_p5 = scmp.lt.s32.totalorder %s1182_s11, %s1175_s20 }
  0x93   : > { %p1179_p13 = pneg %p1178_p7  ;;  %p1185_p1 = por %p1184_p5, %p1183_p6 }
  0x95   : > { %p1186_p9 = pnand %p1185_p1, %p1179_p13 }
  0x97   : > { %1189 = shalt.err (!%p1186_p9)
}
  0x98   : > { %s1934_s9 = smov 8   ;;  %p1935_p0 = scmp.ne.s32.totalorder %s1920_s18, 0 }
  0x99   : > { %965 = dma.hbm_to_vmem [thread:$0]  (!%p1641_p12), %s1635_s5, 1024, %s1637_s14, %s1647_s2, %s1922_s28, %s1921_s30, %s1934_s9  }
  0x9a   : > { %279 = sbr.rel (%p1935_p0) target bundleno = 487 (0x1e7), region = 36  ;;  %p1936_p10 = scmp.eq.s32.totalorder (!%p1935_p0), %s1514_s13, 0 }
  0xa1   : > { %1263 = dma.done.wait (%p1936_p10), [#allocation4], 6144   ;;  %p1937_p11 = pmov %p1936_p10 }
  0xa2   : > { %s285_s6 = sand.u32 1, %s1514_s13   ;;  %s287_s10 = sand.u32 1, %s1296_s19  }
  0xa3   : > { %1265 = vsyncadd (%p1937_p11), [#allocation4], 4294961152  ;;  %s819_s26 = sshll.u32 %s287_s10, 8  ;;  %s286_s29 = scalar_lea.sflag [#allocation7], %s285_s6 }
  0xa4   : > { %s1686_s20 = scalar_lea.vmem [#allocation6], %s819_s26  ;;  %p1938_p8 = scmp.ne.s32.totalorder %s1916_s1, 0 }
  0xa6   : > { %1267 = dma.done.wait (%p1938_p8), %s286_s29, 8192  }
  0xa7   : > { %1269 = vsyncadd (%p1938_p8), %s286_s29, 4294959104  ;;  %s1693_s18 = sand.u32 1, %s1284_s16   ;;  %s1696_s28 = scalar_lea.vmem [#allocation8], %s819_s26 }
  0xa8   : > { %s821_s30 = sshll.u32 %s1693_s18, 6  ;;  %s304_s13 = scalar_lea.sflag [#allocation10], %s1693_s18 }
  0xa9   : > { %s1699_s5 = scalar_lea.vmem [#allocation9], %s821_s30  ;;  %p1939_p12 = scmp.ne.s32.totalorder %s1917_s8, 0 }
  0xab   : > { %1271 = dma.done.wait (%p1939_p12), %s304_s13, 1024  }
  0xac   : > { %1273 = vsyncadd (%p1939_p12), %s304_s13, 4294966272  ;;  %p344_p2 = scmp.eq.s32.totalorder %s1304_s21, 0  ;;  %s1706_s1 = scalar_lea.vmem [#allocation11], %s821_s30 }
  0xad   : > { %v1331_v0 = vmov (%p344_p2), 0.0  }
  0xae   : > { %349 = sbr.rel (!%p344_p2) target bundleno = 181 (0xb5), region = 56  ;;  %350 = vst [vmem:[#allocation2] sm:$0xff] (%p344_p2), %v1331_v0  ;;  %351 = vst [vmem:[#allocation2 + $0x8] sm:$0xff] (%p344_p2), %v1331_v0 }
  0xaf   : > { %352 = vst [vmem:[#allocation2 + $0x10] sm:$0xff] (%p344_p2), %v1331_v0  ;;  %353 = vst [vmem:[#allocation2 + $0x18] sm:$0xff] (%p344_p2), %v1331_v0 }
  0xb0   : > { %354 = vst [vmem:[#allocation2 + $0x20] sm:$0xff] (%p344_p2), %v1331_v0  ;;  %355 = vst [vmem:[#allocation2 + $0x28] sm:$0xff] (%p344_p2), %v1331_v0 }
  0xb1   : > { %356 = vst [vmem:[#allocation2 + $0x30] sm:$0xff] (%p344_p2), %v1331_v0  ;;  %357 = vst [vmem:[#allocation2 + $0x38] sm:$0xff] (%p344_p2), %v1331_v0 }
  0xb5 PF: > { %v374_v1 = vld [vmem:[%s1686_s20 + $0x80] sm:$0xff]  ;;  %v375_v2 = vld [vmem:[%s1686_s20 + $0x88] sm:$0xff]  ;;  %v376_v11 = vld [vmem:[%s1686_s20 + $0x90] sm:$0xff]  ;;  %s832_s8 = sshll.u32 %s1304_s21, 7  ;;  %p603_p4 = scmp.eq.s32.totalorder %s1304_s21, 2 }
  0xb6   : > { %v406_v3 = vld [vmem:[%s1696_s28 + $0x80] sm:$0xff]  ;;  %v407_v4 = vld [vmem:[%s1696_s28 + $0x88] sm:$0xff]  ;;  %v377_v14 = vld [vmem:[%s1686_s20 + $0x98] sm:$0xff]  ;;  %s1771_s14 = scalar_lea.vmem [#allocation3], %s832_s8 }
  0xb7   : > { %v438_v5 = vsub.f32 %v374_v1, %v406_v3  ;;  %v358_v6 = vld [vmem:[%s1686_s20] sm:$0xff]  ;;  %v359_v7 = vld [vmem:[%s1686_s20 + $0x8] sm:$0xff]  ;;  %v439_v8 = vsub.f32 %v375_v2, %v407_v4  ;;  %v408_v15 = vld [vmem:[%s1696_s28 + $0x90] sm:$0xff] }
  0xb8   : > { %v390_v9 = vld [vmem:[%s1696_s28] sm:$0xff]  ;;  %v391_v10 = vld [vmem:[%s1696_s28 + $0x8] sm:$0xff]  ;;  %v409_v16 = vld [vmem:[%s1696_s28 + $0x98] sm:$0xff]  ;;  %v440_v18 = vsub.f32 %v376_v11, %v408_v15 }
  0xb9   : > { %v422_v12 = vsub.f32 %v358_v6, %v390_v9  ;;  %v423_v13 = vsub.f32 %v359_v7, %v391_v10  ;;  %v890_v17 = vpack.c.bf16 %v439_v8, %v438_v5  ;;  %v441_v19 = vsub.f32 %v377_v14, %v409_v16  ;;  %v360_v20 = vld [vmem:[%s1686_s20 + $0x10] sm:$0xff]  ;;  %v361_v21 = vld [vmem:[%s1686_s20 + $0x18] sm:$0xff]  ;;  %v378_v26 = vld [vmem:[%s1686_s20 + $0xa0] sm:$0xff] }
  0xba   : > { %v392_v22 = vld [vmem:[%s1696_s28 + $0x10] sm:$0xff]  ;;  %v393_v24 = vld [vmem:[%s1696_s28 + $0x18] sm:$0xff]  ;;  %v379_v27 = vld [vmem:[%s1686_s20 + $0xa8] sm:$0xff] }
  0xbb   : > { %v892_v23 = vpack.c.bf16 %v423_v13, %v422_v12  ;;  %v424_v25 = vsub.f32 %v360_v20, %v392_v22  ;;  %891 = vmatprep.subr.bf16.mxu0 %v890_v17  ;;  %922 = vmatprep.subr.bf16.mxu1 %v890_v17  ;;  %v894_v28 = vpack.c.bf16 %v441_v19, %v440_v18  ;;  %v410_v30 = vld [vmem:[%s1696_s28 + $0xa0] sm:$0xff]  ;;  %v411_v31 = vld [vmem:[%s1696_s28 + $0xa8] sm:$0xff]  ;;  %v380_v41 = vld [vmem:[%s1686_s20 + $0xb0] sm:$0xff] }
  0xbc   : > { %v425_v29 = vsub.f32 %v361_v21, %v393_v24  ;;  %v362_v32 = vld [vmem:[%s1686_s20 + $0x20] sm:$0xff]  ;;  %v442_v33 = vsub.f32 %v378_v26, %v410_v30  ;;  %v443_v34 = vsub.f32 %v379_v27, %v411_v31  ;;  %v363_v35 = vld [vmem:[%s1686_s20 + $0x28] sm:$0xff]  ;;  %v381_v42 = vld [vmem:[%s1686_s20 + $0xb8] sm:$0xff] }
  0xbd   : > { %893 = vmatpush3.bf16.msra.mxu0 %v892_v23  ;;  %930 = vmatpush3.bf16.msra.mxu1 %v892_v23  ;;  %v394_v36 = vld [vmem:[%s1696_s28 + $0x20] sm:$0xff]  ;;  %v395_v37 = vld [vmem:[%s1696_s28 + $0x28] sm:$0xff]  ;;  %v412_v43 = vld [vmem:[%s1696_s28 + $0xb0] sm:$0xff] }
  0xbe   : > { %895 = vmatprep.subr.bf16.mxu0 %v894_v28  ;;  %923 = vmatprep.subr.bf16.mxu1 %v894_v28  ;;  %v896_v38 = vpack.c.bf16 %v425_v29, %v424_v25  ;;  %v426_v39 = vsub.f32 %v362_v32, %v394_v36  ;;  %v427_v40 = vsub.f32 %v363_v35, %v395_v37  ;;  %v413_v45 = vld [vmem:[%s1696_s28 + $0xb8] sm:$0xff]  ;;  %v364_v47 = vld [vmem:[%s1686_s20 + $0x30] sm:$0xff]  ;;  %v382_v52 = vld [vmem:[%s1686_s20 + $0xc0] sm:$0xff] }
  0xbf   : > { %v898_v44 = vpack.c.bf16 %v443_v34, %v442_v33  ;;  %v444_v46 = vsub.f32 %v380_v41, %v412_v43  ;;  %v365_v48 = vld [vmem:[%s1686_s20 + $0x38] sm:$0xff]  ;;  %v445_v49 = vsub.f32 %v381_v42, %v413_v45  ;;  %v396_v50 = vld [vmem:[%s1696_s28 + $0x30] sm:$0xff]  ;;  %v383_v56 = vld [vmem:[%s1686_s20 + $0xc8] sm:$0xff] }
  0xc0   : > { %v397_v51 = vld [vmem:[%s1696_s28 + $0x38] sm:$0xff]  ;;  %v900_v53 = vpack.c.bf16 %v427_v40, %v426_v39  ;;  %v428_v54 = vsub.f32 %v364_v47, %v396_v50  ;;  %v414_v57 = vld [vmem:[%s1696_s28 + $0xc0] sm:$0xff]  ;;  %v415_v58 = vld [vmem:[%s1696_s28 + $0xc8] sm:$0xff] }
  0xc1   : > { %897 = vmatpush3.bf16.msra.mxu0 %v896_v38  ;;  %931 = vmatpush3.bf16.msra.mxu1 %v896_v38  ;;  %v429_v55 = vsub.f32 %v365_v48, %v397_v51  ;;  %v902_v59 = vpack.c.bf16 %v445_v49, %v444_v46  ;;  %v446_v60 = vsub.f32 %v382_v52, %v414_v57  ;;  %v366_v62 = vld [vmem:[%s1686_s20 + $0x40] sm:$0xff]  ;;  %v367_v63 = vld [vmem:[%s1686_s20 + $0x48] sm:$0xff]  ;;  %v384_v2 = vld [vmem:[%s1686_s20 + $0xd0] sm:$0xff] }
  0xc2   : > { %899 = vmatprep.subr.bf16.mxu0 %v898_v44  ;;  %924 = vmatprep.subr.bf16.mxu1 %v898_v44  ;;  %v447_v61 = vsub.f32 %v383_v56, %v415_v58  ;;  %v398_v0 = vld [vmem:[%s1696_s28 + $0x40] sm:$0xff]  ;;  %v399_v1 = vld [vmem:[%s1696_s28 + $0x48] sm:$0xff]  ;;  %v385_v3 = vld [vmem:[%s1686_s20 + $0xd8] sm:$0xff] }
  0xc3   : > { %v416_v4 = vld [vmem:[%s1696_s28 + $0xd0] sm:$0xff]  ;;  %v417_v5 = vld [vmem:[%s1696_s28 + $0xd8] sm:$0xff]  ;;  %v904_v6 = vpack.c.bf16 %v429_v55, %v428_v54  ;;  %v430_v7 = vsub.f32 %v366_v62, %v398_v0  ;;  %v431_v8 = vsub.f32 %v367_v63, %v399_v1  ;;  %v386_v16 = vld [vmem:[%s1686_s20 + $0xe0] sm:$0xff] }
  0xc4   : > { %v368_v9 = vld [vmem:[%s1686_s20 + $0x50] sm:$0xff]  ;;  %v369_v10 = vld [vmem:[%s1686_s20 + $0x58] sm:$0xff]  ;;  %v906_v11 = vpack.c.bf16 %v447_v61, %v446_v60  ;;  %v448_v12 = vsub.f32 %v384_v2, %v416_v4  ;;  %v449_v13 = vsub.f32 %v385_v3, %v417_v5  ;;  %v387_v17 = vld [vmem:[%s1686_s20 + $0xe8] sm:$0xff] }
  0xc5   : > { %901 = vmatpush3.bf16.msra.mxu0 %v900_v53  ;;  %932 = vmatpush3.bf16.msra.mxu1 %v900_v53  ;;  %v400_v14 = vld [vmem:[%s1696_s28 + $0x50] sm:$0xff]  ;;  %v401_v15 = vld [vmem:[%s1696_s28 + $0x58] sm:$0xff]  ;;  %v418_v18 = vld [vmem:[%s1696_s28 + $0xe0] sm:$0xff]  ;;  %v908_v21 = vpack.c.bf16 %v431_v8, %v430_v7 }
  0xc6   : > { %903 = vmatprep.subr.bf16.mxu0 %v902_v59  ;;  %925 = vmatprep.subr.bf16.mxu1 %v902_v59  ;;  %v419_v19 = vld [vmem:[%s1696_s28 + $0xe8] sm:$0xff]  ;;  %v370_v20 = vld [vmem:[%s1686_s20 + $0x60] sm:$0xff]  ;;  %v432_v22 = vsub.f32 %v368_v9, %v400_v14  ;;  %v433_v23 = vsub.f32 %v369_v10, %v401_v15  ;;  %v910_v27 = vpack.c.bf16 %v449_v13, %v448_v12  ;;  %v388_v30 = vld [vmem:[%s1686_s20 + $0xf0] sm:$0xff] }
  0xc7   : > { %v371_v24 = vld [vmem:[%s1686_s20 + $0x68] sm:$0xff]  ;;  %v402_v25 = vld [vmem:[%s1696_s28 + $0x60] sm:$0xff]  ;;  %v450_v28 = vsub.f32 %v386_v16, %v418_v18  ;;  %v451_v29 = vsub.f32 %v387_v17, %v419_v19  ;;  %v389_v31 = vld [vmem:[%s1686_s20 + $0xf8] sm:$0xff] }
  0xc8   : > { %v403_v26 = vld [vmem:[%s1696_s28 + $0x68] sm:$0xff]  ;;  %v420_v32 = vld [vmem:[%s1696_s28 + $0xf0] sm:$0xff]  ;;  %v421_v33 = vld [vmem:[%s1696_s28 + $0xf8] sm:$0xff]  ;;  %v912_v36 = vpack.c.bf16 %v433_v23, %v432_v22  ;;  %v434_v37 = vsub.f32 %v370_v20, %v402_v25 }
  0xc9   : > { %905 = vmatpush3.bf16.msra.mxu0 %v904_v6  ;;  %933 = vmatpush3.bf16.msra.mxu1 %v904_v6  ;;  %v459_v34 = vld [vmem:[%s1771_s14 + $0x8] sm:$0xff]  ;;  %v435_v38 = vsub.f32 %v371_v24, %v403_v26  ;;  %v372_v39 = vld [vmem:[%s1686_s20 + $0x70] sm:$0xff]  ;;  %v914_v40 = vpack.c.bf16 %v451_v29, %v450_v28  ;;  %v452_v41 = vsub.f32 %v388_v30, %v420_v32  ;;  %v373_v43 = vld [vmem:[%s1686_s20 + $0x78] sm:$0xff] }
  0xca   : > { %907 = vmatprep.subr.bf16.mxu0 %v906_v11  ;;  %926 = vmatprep.subr.bf16.mxu1 %v906_v11  ;;  %v467_v35 = vld [vmem:[%s1771_s14 + $0x48] sm:$0xff]  ;;  %v453_v42 = vsub.f32 %v389_v31, %v421_v33  ;;  %v404_v44 = vld [vmem:[%s1696_s28 + $0x70] sm:$0xff]  ;;  %v405_v45 = vld [vmem:[%s1696_s28 + $0x78] sm:$0xff] }
  0xcb   : > { %546 = vmatprep.mubr.f32.mxu0 %v459_v34  ;;  %566 = vmatprep.mubr.f32.mxu1 %v467_v35  ;;  %v916_v46 = vpack.c.bf16 %v435_v38, %v434_v37  ;;  %v436_v47 = vsub.f32 %v372_v39, %v404_v44  ;;  %v437_v48 = vsub.f32 %v373_v43, %v405_v45  ;;  %v458_v51 = vld [vmem:[%s1771_s14] sm:$0xff]  ;;  %v461_v53 = vld [vmem:[%s1771_s14 + $0x18] sm:$0xff]  ;;  %v460_v55 = vld [vmem:[%s1771_s14 + $0x10] sm:$0xff] }
  0xcc   : > { %v918_v49 = vpack.c.bf16 %v453_v42, %v452_v41  ;;  %v466_v52 = vld [vmem:[%s1771_s14 + $0x40] sm:$0xff]  ;;  %v469_v54 = vld [vmem:[%s1771_s14 + $0x58] sm:$0xff]  ;;  %v468_v56 = vld [vmem:[%s1771_s14 + $0x50] sm:$0xff] }
  0xcd   : > { %909 = vmatpush3.bf16.msra.mxu0 %v908_v21  ;;  %934 = vmatpush3.bf16.msra.mxu1 %v908_v21  ;;  %v920_v50 = vpack.c.bf16 %v437_v48, %v436_v47  ;;  %v463_v57 = vld [vmem:[%s1771_s14 + $0x28] sm:$0xff]  ;;  %v462_v59 = vld [vmem:[%s1771_s14 + $0x20] sm:$0xff]  ;;  %v465_v61 = vld [vmem:[%s1771_s14 + $0x38] sm:$0xff] }
  0xce   : > { %911 = vmatprep.subr.bf16.mxu0 %v910_v27  ;;  %927 = vmatprep.subr.bf16.mxu1 %v910_v27  ;;  %v471_v58 = vld [vmem:[%s1771_s14 + $0x68] sm:$0xff]  ;;  %v470_v60 = vld [vmem:[%s1771_s14 + $0x60] sm:$0xff]  ;;  %v473_v62 = vld [vmem:[%s1771_s14 + $0x78] sm:$0xff] }
  0xcf   : > { %v464_v63 = vld [vmem:[%s1771_s14 + $0x30] sm:$0xff]  ;;  %v474_v3 = vld [vmem:[#allocation2] sm:$0xff]  ;;  %v475_v13 = vld [vmem:[#allocation2 + $0x8] sm:$0xff] }
  0xd0   : > { %v472_v0 = vld [vmem:[%s1771_s14 + $0x70] sm:$0xff]  ;;  %v478_v5 = vld [vmem:[#allocation2 + $0x20] sm:$0xff]  ;;  %v479_v15 = vld [vmem:[#allocation2 + $0x28] sm:$0xff] }
  0xd1   : > { %913 = vmatpush3.bf16.msra.mxu0 %v912_v36  ;;  %935 = vmatpush3.bf16.msra.mxu1 %v912_v36  ;;  %v476_v23 = vld [vmem:[#allocation2 + $0x10] sm:$0xff]  ;;  %v477_v33 = vld [vmem:[#allocation2 + $0x18] sm:$0xff]  ;;  %v608_v41 = vld [vmem:[%s1699_s5] sm:$0xff] (%p603_p4) }
  0xd2   : > { %915 = vmatprep.subr.bf16.mxu0 %v914_v40  ;;  %928 = vmatprep.subr.bf16.mxu1 %v914_v40  ;;  %v480_v25 = vld [vmem:[#allocation2 + $0x30] sm:$0xff]  ;;  %v481_v35 = vld [vmem:[#allocation2 + $0x38] sm:$0xff]  ;;  %v609_v43 = vld [vmem:[%s1699_s5 + $0x8] sm:$0xff] (%p603_p4) }
  0xd5   : > { %917 = vmatpush3.bf16.msra.mxu0 %v916_v46  ;;  %936 = vmatpush3.bf16.msra.mxu1 %v916_v46  ;;  %v610_v46 = vld [vmem:[%s1699_s5 + $0x10] sm:$0xff] (%p603_p4) }
  0xd6   : > { %919 = vmatprep.subr.bf16.mxu0 %v918_v49  ;;  %929 = vmatprep.subr.bf16.mxu1 %v918_v49 }
  0xd9   : > { %921 = vmatpush3.bf16.msra.mxu0 %v920_v50  ;;  %937 = vmatpush3.bf16.msra.mxu1 %v920_v50  ;;  %v611_v50 = vld [vmem:[%s1699_s5 + $0x18] sm:$0xff] (%p603_p4) }
  0xdc   : > { %547 = vmatmul.mubr.f32.vlgmr.msra.gmra.mrb[0].mxu0 %v458_v51  ;;  %567 = vmatmul.mubr.f32.vlgmr.msra.gmra.mrb[0].mxu1 %v466_v52  ;;  %v612_v52 = vld [vmem:[%s1699_s5 + $0x20] sm:$0xff] (%p603_p4) }
  0xdd   : > { %551 = vmatprep.mubr.f32.mxu0 %v461_v53  ;;  %571 = vmatprep.mubr.f32.mxu1 %v469_v54 }
  0xe0   : > { %552 = vmatmul.mubr.f32.gmra.mrb[2].mxu0 %v460_v55  ;;  %572 = vmatmul.mubr.f32.gmra.mrb[2].mxu1 %v468_v56  ;;  %v613_v55 = vld [vmem:[%s1699_s5 + $0x28] sm:$0xff] (%p603_p4) }
  0xe1   : > { %556 = vmatprep.mubr.f32.mxu0 %v463_v57  ;;  %576 = vmatprep.mubr.f32.mxu1 %v471_v58 }
  0xe4   : > { %557 = vmatmul.mubr.f32.gmra.mrb[4].mxu0 %v462_v59  ;;  %577 = vmatmul.mubr.f32.gmra.mrb[4].mxu1 %v470_v60  ;;  %v614_v59 = vld [vmem:[%s1699_s5 + $0x30] sm:$0xff] (%p603_p4) }
  0xe5   : > { %561 = vmatprep.mubr.f32.mxu0 %v465_v61  ;;  %581 = vmatprep.mubr.f32.mxu1 %v473_v62  ;;  %v615_v61 = vld [vmem:[%s1699_s5 + $0x38] sm:$0xff] (%p603_p4) }
  0xe8   : > { %562 = vmatmul.mubr.f32.gmra.mrb[6].mxu0 %v464_v63  ;;  %582 = vmatmul.mubr.f32.gmra.mrb[6].mxu1 %v472_v0 }
 0x1af   : > { %v866_v1 = vpop.f32.mrb[0].mxu0  ;;  %v878_v2 = vpop.f32.mrb[0].mxu1 }
 0x1b0   : > { %v867_v4 = vpop.f32.mrb[1].mxu0  ;;  %v879_v6 = vpop.f32.mrb[1].mxu1 }
 0x1b1   : > { %v868_v7 = vadd.f32 %v867_v4, %v866_v1  ;;  %v880_v8 = vadd.f32 %v879_v6, %v878_v2 }
 0x1b3   : > { %v587_v9 = vadd.f32 %v868_v7, %v474_v3  ;;  %v591_v10 = vadd.f32 %v880_v8, %v478_v5  ;;  %v869_v11 = vpop.f32.mrb[2].mxu0  ;;  %v881_v12 = vpop.f32.mrb[2].mxu1 }
 0x1b4   : > { %v870_v14 = vpop.f32.mrb[3].mxu0  ;;  %v882_v16 = vpop.f32.mrb[3].mxu1 }
 0x1b5   : > { %595 = vst [vmem:[#allocation2] sm:$0xff] %v587_v9  ;;  %599 = vst [vmem:[#allocation2 + $0x20] sm:$0xff] %v591_v10  ;;  %v871_v17 = vadd.f32 %v870_v14, %v869_v11  ;;  %v883_v18 = vadd.f32 %v882_v16, %v881_v12 }
 0x1b7   : > { %v588_v19 = vadd.f32 %v871_v17, %v475_v13  ;;  %v592_v20 = vadd.f32 %v883_v18, %v479_v15  ;;  %v872_v21 = vpop.f32.mrb[4].mxu0  ;;  %v884_v22 = vpop.f32.mrb[4].mxu1 }
 0x1b8   : > { %v873_v24 = vpop.f32.mrb[5].mxu0  ;;  %v885_v26 = vpop.f32.mrb[5].mxu1 }
 0x1b9   : > { %596 = vst [vmem:[#allocation2 + $0x8] sm:$0xff] %v588_v19  ;;  %600 = vst [vmem:[#allocation2 + $0x28] sm:$0xff] %v592_v20  ;;  %v874_v27 = vadd.f32 %v873_v24, %v872_v21  ;;  %v886_v28 = vadd.f32 %v885_v26, %v884_v22 }
 0x1bb   : > { %v589_v29 = vadd.f32 %v874_v27, %v476_v23  ;;  %v593_v30 = vadd.f32 %v886_v28, %v480_v25  ;;  %v875_v31 = vpop.f32.mrb[6].mxu0  ;;  %v887_v32 = vpop.f32.mrb[6].mxu1  ;;  %607 = sbr.rel (!%p603_p4) target bundleno = 461 (0x1cd), region = 60 }
 0x1bc   : > { %v876_v34 = vpop.f32.mrb[7].mxu0  ;;  %v888_v36 = vpop.f32.mrb[7].mxu1  ;;  %v616_v42 = vld [vmem:[#allocation2] sm:$0xff] (%p603_p4) }
 0x1bd   : > { %597 = vst [vmem:[#allocation2 + $0x10] sm:$0xff] %v589_v29  ;;  %601 = vst [vmem:[#allocation2 + $0x30] sm:$0xff] %v593_v30  ;;  %v877_v37 = vadd.f32 %v876_v34, %v875_v31  ;;  %v889_v38 = vadd.f32 %v888_v36, %v887_v32  ;;  %v624_v44 = vadd.f32 (%p603_p4), %v616_v42, %v608_v41  ;;  %v620_v54 = vld [vmem:[#allocation2 + $0x20] sm:$0xff] (%p603_p4) }
 0x1be   : > { %v628_v57 = vadd.f32 (%p603_p4), %v620_v54, %v612_v52 }
 0x1bf   : > { %v590_v39 = vadd.f32 %v877_v37, %v477_v33  ;;  %v594_v40 = vadd.f32 %v889_v38, %v481_v35  ;;  %632 = vst [vmem:[%s1706_s1] sm:$0xff] (%p603_p4), %v624_v44 }
 0x1c0   : > { %v617_v45 = vld [vmem:[#allocation2 + $0x8] sm:$0xff] (%p603_p4)  ;;  %636 = vst [vmem:[%s1706_s1 + $0x20] sm:$0xff] (%p603_p4), %v628_v57 }
 0x1c1   : > { %598 = vst [vmem:[#allocation2 + $0x18] sm:$0xff] %v590_v39  ;;  %602 = vst [vmem:[#allocation2 + $0x38] sm:$0xff] %v594_v40  ;;  %v625_v48 = vadd.f32 (%p603_p4), %v617_v45, %v609_v43  ;;  %v621_v56 = vld [vmem:[#allocation2 + $0x28] sm:$0xff] (%p603_p4) }
 0x1c2   : > { %v629_v58 = vadd.f32 %v621_v56, %v613_v55 }
 0x1c3   : > { %633 = vst [vmem:[%s1706_s1 + $0x8] sm:$0xff] %v625_v48 }
 0x1c4   : > { %v618_v47 = vld [vmem:[#allocation2 + $0x10] sm:$0xff]  ;;  %637 = vst [vmem:[%s1706_s1 + $0x28] sm:$0xff] %v629_v58 }
 0x1c5   : > { %v626_v49 = vadd.f32 %v618_v47, %v610_v46  ;;  %v622_v60 = vld [vmem:[#allocation2 + $0x30] sm:$0xff] }
 0x1c6   : > { %v630_v62 = vadd.f32 %v622_v60, %v614_v59 }
 0x1c7   : > { %634 = vst [vmem:[%s1706_s1 + $0x10] sm:$0xff] %v626_v49 }
 0x1c8   : > { %v619_v51 = vld [vmem:[#allocation2 + $0x18] sm:$0xff]  ;;  %638 = vst [vmem:[%s1706_s1 + $0x30] sm:$0xff] %v630_v62 }
 0x1c9   : > { %v627_v53 = vadd.f32 %v619_v51, %v611_v50  ;;  %v623_v63 = vld [vmem:[#allocation2 + $0x38] sm:$0xff] }
 0x1ca   : > { %v631_v0 = vadd.f32 %v623_v63, %v615_v61 }
 0x1cb   : > { %635 = vst [vmem:[%s1706_s1 + $0x18] sm:$0xff] %v627_v53 }
 0x1cc   : > { %639 = vst [vmem:[%s1706_s1 + $0x38] sm:$0xff] %v631_v0 }
 0x1cd PF: > { %s828_s21 = sshll.u32 %s1308_s22, 7  ;;  %s653_s11 = sshll.u32 %s1706_s1, 4  ;;  %s1819_s11 = int_to_ptr.vmem [resolvable:$true] %s653_s11 }
 0x1ce   : > { %s1816_s12 = scalar_lea.hbm %s1886_s4, %s828_s21  ;;  %s641_s9 = scalar_lea.sflag [#allocation5], %s1693_s18 }
 0x1cf   : > { %s1190_s6 = scalar_lea.vmem %s1819_s11, 1024  ;;  %s1332_s10 = smov [#allocation11]  }
 0x1d0   : > { %p1191_p7 = scmp.ne.s32.totalorder %s1819_s11, %s1190_s6  ;;  %s1194_s26 = sshll.u32 %s1332_s10, 4  ;;  %s1195_s26 = int_to_ptr.vmem [resolvable:$false] %s1194_s26 }
 0x1d1   : > { %s1196_s22 = scalar_lea.vmem %s1195_s26, 2048  ;;  %p1197_p5 = scmp.lt.s32.totalorder %s1819_s11, %s1195_s26 }
 0x1d2   : > { %p1192_p13 = pnand %p1191_p7, %p1625_p3  ;;  %p1198_p1 = scmp.lt.s32.totalorder %s1196_s22, %s1190_s6 }
 0x1d4   : > { %p1193_p6 = pneg %p1192_p13  ;;  %p1199_p9 = por %p1198_p1, %p1197_p5 }
 0x1d6   : > { %p1200_p0 = pnand %p1199_p9, %p1193_p6 }
 0x1d8   : > { %1203 = shalt.err (!%p1200_p0)
}
 0x1d9   : > { %s1204_s29 = scalar_lea.hbm %s1816_s12, 1024  ;;  %s1208_s28 = scalar_lea.hbm %s1886_s4, 3072 }
 0x1da   : > { %p1205_p10 = scmp.ne.s32.totalorder %s1816_s12, %s1204_s29  ;;  %p1209_p12 = scmp.lt.u32.totalorder %s1816_s12, %s1886_s4 }
 0x1db   : > { %p1210_p2 = scmp.lt.u32.totalorder %s1208_s28, %s1204_s29  ;;  %p1212_p7 = scmp.lt.u32.totalorder %s1204_s29, %s1816_s12 }
 0x1dc   : > { %p1206_p11 = pnand %p1205_p10, %p1625_p3 }
 0x1dd   : > { %p1211_p4 = por %p1210_p2, %p1209_p12 }
 0x1de   : > { %p1207_p8 = pneg %p1206_p11 }
 0x1df   : > { %p1213_p13 = por %p1212_p7, %p1211_p4 }
 0x1e1   : > { %p1214_p6 = pnand %p1213_p13, %p1207_p8 }
 0x1e3   : > { %1217 = shalt.err (!%p1214_p6)
}
 0x1e4   : > { %s1333_s1 = smov 128   ;;  %s1334_s8 = smov 384  }
 0x1e5   : > { %s1335_s14 = smov 8  }
 0x1e6   : > { %950 = dma.vmem_to_hbm [thread:$0]  (%p1625_p3), %s1819_s11, 1024, %s1816_s12, %s641_s9, %s1333_s1, %s1334_s8, %s1335_s14  }
 0x1e7 PF: > { %s1940_s21 = sld [smem:[#allocation21_spill]]  ;;  %p973_p5 = scmp.ge.s32.totalorder %s1320_s25, 2 }
 0x1e8   : > { %s668_s2 = sand.u32 1, %s1280_s15  }
 0x1e9   : > { %s669_s7 = scalar_lea.sflag [#allocation5], %s668_s2 }
 0x1ed   : > { %p1941_p1 = scmp.ne.s32.totalorder %s1940_s21, 0 }
 0x1ef   : > { %p967_p9 = pnand %p973_p5, %p1941_p1 }
 0x1f1   : > { %1275 = dma.done.wait (!%p967_p9), %s669_s7, 1024  }
 0x1f2   : > { %1277 = vsyncadd (!%p967_p9), %s669_s7, 4294966272  ;;  %s24_s25 = sadd.s32 1, %s1320_s25   ;;  %s1942_s23 = sld [smem:[#allocation16_spill]] }
 0x1f3   : > { %p21_p0 = scmp.ge.s32.totalorder %s24_s25, 11   ;;  %s1943_s20 = sld [smem:[#allocation20_spill]] }
 0x1f4   : > { %s1944_s21 = sld [smem:[#allocation17_spill]]  ;;  %s1945_s12 = sld [smem:[#allocation18_spill]] }
 0x1f5   : > { %s1946_s11 = sld [smem:[#allocation19_spill]]  ;;  %s1947_s15 = smov %s1284_s16 }
 0x1f6   : > { %s1948_s16 = smov %s1288_s17  ;;  %s1949_s17 = smov %s1613_s27 }
 0x1f7   : > { %s1950_s18 = smov %s1296_s19  ;;  %s1952_s22 = smov %s1316_s24 }
 0x1f8   : > { %s1951_s19 = smov %s1942_s23  ;;  %23 = sbr.rel (!%p21_p0) target bundleno = 15 (0xf), region = 119 }
 0x1fa   : > { %s1953_s23 = smov %s1945_s12 }
 0x1fb   : > { %s1954_s24 = smov %s1946_s11 }
 0x1ff   :  { %674 = vsyncpa [#allocation4], 1 }
 0x200   :  { %676 = vsyncpa [#allocation4 + $0x1], 1 }
 0x201   :  { %677 = vsyncpa [#allocation7], 1 }
 0x202   :  { %679 = vsyncpa [#allocation7 + $0x1], 1 }
 0x203   :  { %680 = vsyncpa [#allocation10], 1 }
 0x204   :  { %682 = vsyncpa [#allocation10 + $0x1], 1 }
 0x205   :  { %683 = vsyncpa [#allocation5], 1 }
 0x206   :  { %685 = vsyncpa [#allocation5 + $0x1], 1 }

</bundles_post_ra>
